<compile_context>
chip_gen: v5e
topology: v5e:2x2
jax: 0.10.0
libtpu: 0.0.40
codegen_flags: <defaults>
</compile_context>

<pallas_src>
import jax
import jax.numpy as jnp
from jax import lax
from jax.experimental import pallas as pl
from jax.experimental.pallas import tpu as pltpu


def basic_block_kernel(x_ref, w1_ref, s1_ref, b1_ref, w2_ref, s2_ref, b2_ref,
                       o_ref, col_ref):
    # x_ref : (Nb, H, W*C)        f32 input tile (batch folded into the block)
    # w*_ref: (3*W*C, W*C)        bf16 fused block-Toeplitz conv weights
    # s/b   : (1, W*C)            f32 folded BN scale / bias (tiled over W)
    # o_ref : (Nb, H, W*C)        f32 output tile
    # col_ref: (Nb, H, 3*W*C)     bf16 im2col-along-H scratch slab
    Nb, H, WC = x_ref.shape
    K3 = 3 * WC

    # Zero only the two halo row-segments (top row of the dh=-1 tap, bottom
    # row of the dh=+1 tap).  The interior tap copies below never touch them
    # and both convs share them.  Done every grid step so correctness does not
    # depend on which TensorCore owns the scratch under "parallel" semantics.
    zrow = jnp.zeros((Nb, 1, WC), col_ref.dtype)
    col_ref[:, 0:1, 0:WC] = zrow
    col_ref[:, H - 1:H, 2 * WC:K3] = zrow

    x = x_ref[...]  # (Nb, H, WC) f32, kept live for the residual add

    def conv3x3(act_bf16, w_ref):
        # Build im2col slab: col[:, h, dh*WC:(dh+1)*WC] = act row (h + dh - 1)
        # (rows -1 and H are the pre-zeroed halo segments above).
        col_ref[:, :, WC:2 * WC] = act_bf16                     # dh=0, aligned
        col_ref[:, 1:H, 0:WC] = act_bf16[:, 0:H - 1, :]         # dh=-1 (shift)
        col_ref[:, 0:H - 1, 2 * WC:K3] = act_bf16[:, 1:H, :]    # dh=+1 (shift)
        # Layout-preserving reshape (H % 8 == 0, lane dim unchanged).
        slab = col_ref[...].reshape(Nb * H, K3)                 # bf16
        y = jnp.dot(slab, w_ref[...], preferred_element_type=jnp.float32)
        return y.reshape(Nb, H, WC)

    # bn1 + relu1 (lane-dense elementwise), cast once to bf16 for the MXU.
    a1 = jnp.maximum(x * s1_ref[0] + b1_ref[0], 0.0).astype(jnp.bfloat16)
    y1 = conv3x3(a1, w1_ref)
    # bn2 + relu2
    a2 = jnp.maximum(y1 * s2_ref[0] + b2_ref[0], 0.0).astype(jnp.bfloat16)
    y2 = conv3x3(a2, w2_ref)
    # residual add in f32 (downsample is None -> identity = x)
    o_ref[...] = y2 + x


def _default_block_n(N):
    # Prefer a grid of >= 2 steps (v7x has 2 TensorCores) while keeping the
    # matmul M dim (= block_n * H) as large as possible: largest proper
    # divisor of N.  For large N, pick block_n so block_n*H >= 256.
    if N <= 1:
        return 1
    for d in range(N // 2, 0, -1):
        if N % d == 0:
            return d
    return 1


def basic_block_pallas(x_nchw, w1_oihw, bn1, w2_oihw, bn2, eps=1e-5,
                       block_n=None):
    """x_nchw: (N, C, H, W) float32. Returns (N, C, H, W) float32."""
    N, C, H, W = x_nchw.shape
    WC = W * C
    assert w1_oihw.shape == (C, C, 3, 3) and w2_oihw.shape == (C, C, 3, 3)
    # Lane-density / layout guards: keep every load/store unmasked and the
    # im2col slab reshape layout-preserving (perf cliffs otherwise).
    assert WC % 128 == 0, "fused W*C lane dim must be a multiple of 128"
    assert H % 8 == 0, "H must be a multiple of 8 (sublane-aligned slab)"

    if block_n is None:
        block_n = _default_block_n(N)
    assert N % block_n == 0

    # NCHW -> (N, H, W*C): channels fastest within the fused lane dim.
    x = jnp.transpose(x_nchw, (0, 2, 3, 1)).reshape(N, H, WC).astype(jnp.float32)

    def build_wbig(w_oihw):
        # Fused block-Toeplitz weights, taps stacked along K:
        #   Wbig[dh*WC + w_in*C + ci, w_out*C + co] = w[co, ci, dh, dw]
        # where w_in = w_out + dw - 1 (valid range only, so the W-boundary
        # zero padding is folded into the weights).
        taps = []
        for dh in range(3):
            m = jnp.zeros((WC, WC), jnp.float32)
            for dw in range(3):
                e = jnp.eye(W, W, k=-(dw - 1), dtype=jnp.float32)
                t = jnp.transpose(w_oihw[:, :, dh, dw]).astype(jnp.float32)  # (Cin, Cout)
                m = m + jnp.kron(e, t)
            taps.append(m)
        return jnp.concatenate(taps, axis=0).astype(jnp.bfloat16)  # (3*WC, WC)

    w1 = build_wbig(w1_oihw)
    w2 = build_wbig(w2_oihw)

    # Fold eval-mode BatchNorm into per-channel scale/bias, tiled over W so it
    # broadcasts over the fused (W*C) lane dim.
    def fold_bn(bn):
        gamma, beta, mean, var = [jnp.asarray(t, jnp.float32) for t in bn]
        scale = gamma / jnp.sqrt(var + eps)
        bias = beta - mean * scale
        return (jnp.tile(scale, W).reshape(1, WC),
                jnp.tile(bias, W).reshape(1, WC))

    s1, b1 = fold_bn(bn1)
    s2, b2 = fold_bn(bn2)

    xspec = pl.BlockSpec((block_n, H, WC), lambda n: (n, 0, 0))

    def const_spec(shape):
        # Grid-invariant operands: single-buffer them (never re-fetched), so
        # they don't burn 2x VMEM.  Fall back gracefully if pipeline_mode is
        # unavailable in this jax version.
        idx = lambda n, _d=len(shape): (0,) * _d
        try:
            return pl.BlockSpec(shape, idx, pipeline_mode=pl.Buffered(1))
        except TypeError:
            return pl.BlockSpec(shape, idx)

    wspec = const_spec((3 * WC, WC))
    vspec = const_spec((1, WC))

    # Explicit VMEM budget (v7x has only 64 MiB/TC): activations double-
    # buffered, weights single-buffered, plus the bf16 im2col scratch.
    act_bytes = block_n * H * WC * 4
    vmem_limit = int(2.0 * (4 * act_bytes                 # x + out tiles, double-buffered
                            + 2 * 3 * WC * WC * 2         # both conv weights (bf16)
                            + block_n * H * 3 * WC * 2    # im2col scratch (bf16)
                            + 8 * WC * 4))                # folded BN scale/bias
    vmem_limit = max(vmem_limit, 32 << 20)
    vmem_limit = min(vmem_limit, 64 << 20)

    grid_spec = pltpu.PrefetchScalarGridSpec(
        num_scalar_prefetch=0,
        grid=(N // block_n,),
        in_specs=[xspec, wspec, vspec, vspec, wspec, vspec, vspec],
        out_specs=xspec,
        scratch_shapes=[pltpu.VMEM((block_n, H, 3 * WC), jnp.bfloat16)],
    )

    out = pl.pallas_call(
        basic_block_kernel,
        out_shape=jax.ShapeDtypeStruct((N, H, WC), jnp.float32),
        grid_spec=grid_spec,
        compiler_params=pltpu.CompilerParams(
            dimension_semantics=("parallel",),
            vmem_limit_bytes=vmem_limit),
    )(x, w1, s1, b1, w2, s2, b2)

    # (N, H, W*C) -> NCHW
    return jnp.transpose(out.reshape(N, H, W, C), (0, 3, 1, 2))


def basic_block_reference(x_nchw, w1_oihw, bn1, w2_oihw, bn2, eps=1e-5,
                          conv_dtype=jnp.float32):
    """Pure-JAX reference (eval-mode BN), NCHW like PyTorch.

    conv_dtype=bfloat16 mirrors the kernel's bf16 MXU operands (f32 accumulate)
    for a tight numerical comparison; float32 gives the exact PyTorch math.
    """
    def bn(x, p):
        gamma, beta, mean, var = p
        s = (gamma / jnp.sqrt(var + eps)).reshape(1, -1, 1, 1)
        b = (beta - mean * gamma / jnp.sqrt(var + eps)).reshape(1, -1, 1, 1)
        return x * s + b

    def conv(x, w):
        return lax.conv_general_dilated(
            x.astype(conv_dtype), w.astype(conv_dtype),
            window_strides=(1, 1), padding=((1, 1), (1, 1)),
            dimension_numbers=("NCHW", "OIHW", "NCHW"),
            preferred_element_type=jnp.float32)

    identity = x_nchw
    h = jnp.maximum(bn(x_nchw, bn1), 0.0)
    h = conv(h, w1_oihw)
    h = jnp.maximum(bn(h, bn2), 0.0)
    h = conv(h, w2_oihw)
    return h + identity


if __name__ == "__main__":
    key = jax.random.PRNGKey(0)
    N, C, H, W = 2, 8, 16, 16   # inplanes = planes = 8, W*C = 128 (lane dense)

    k = jax.random.split(key, 8)
    x = jax.random.normal(k[0], (N, C, H, W), jnp.float32)
    w1 = jax.random.normal(k[1], (C, C, 3, 3), jnp.float32) * 0.1
    w2 = jax.random.normal(k[2], (C, C, 3, 3), jnp.float32) * 0.1

    bn1 = (1.0 + 0.1 * jax.random.normal(k[3], (C,), jnp.float32),    # gamma
           0.1 * jax.random.normal(k[4], (C,), jnp.float32),          # beta
           0.05 * jax.random.normal(k[5], (C,), jnp.float32),         # running_mean
           1.0 + 0.1 * jnp.abs(jax.random.normal(k[6], (C,), jnp.float32)))  # running_var
    bn2 = (1.0 - 0.05 * jax.random.normal(k[7], (C,), jnp.float32),
           0.05 * jnp.ones((C,), jnp.float32),
           jnp.zeros((C,), jnp.float32),
           jnp.ones((C,), jnp.float32))

    out = basic_block_pallas(x, w1, bn1, w2, bn2)
    out = jax.block_until_ready(out)
    assert out.shape == (N, C, H, W), out.shape

    # Tight check against a reference with the same bf16 conv operands.
    ref_bf16 = jax.block_until_ready(
        basic_block_reference(x, w1, bn1, w2, bn2, conv_dtype=jnp.bfloat16))
    err_bf16 = float(jnp.max(jnp.abs(out - ref_bf16)))
    assert err_bf16 < 2e-3, f"max abs err vs bf16-matched reference {err_bf16}"

    # Looser sanity check against the full-f32 reference (bf16 rounding only).
    ref_f32 = jax.block_until_ready(
        basic_block_reference(x, w1, bn1, w2, bn2, conv_dtype=jnp.float32))
    err_f32 = float(jnp.max(jnp.abs(out - ref_f32)))
    assert err_f32 < 1e-1, f"max abs err vs f32 reference {err_f32}"

    print("KERNEL_OK")
</pallas_src>

<mosaic_0001>
module attributes {stable_mosaic.version = 11 : i64} {
  func.func @basic_block_kernel(%arg0: i32, %arg1: memref<1x16x128xf32, #tpu.memory_space<vmem>>, %arg2: memref<384x128xbf16, #tpu.memory_space<vmem>>, %arg3: memref<1x128xf32, #tpu.memory_space<vmem>>, %arg4: memref<1x128xf32, #tpu.memory_space<vmem>>, %arg5: memref<384x128xbf16, #tpu.memory_space<vmem>>, %arg6: memref<1x128xf32, #tpu.memory_space<vmem>>, %arg7: memref<1x128xf32, #tpu.memory_space<vmem>>, %arg8: memref<1x16x128xf32, #tpu.memory_space<vmem>>, %arg9: memref<1x16x384xbf16, #tpu.memory_space<vmem>>) attributes {dimension_semantics = [#tpu.dimension_semantics<parallel>], iteration_bounds = array<i64: 2>, scalar_prefetch = 0 : i64, scratch_operands = 1 : i64, tpu.core_type = #tpu.core_type<tc>, window_params = [{transform_indices = @transform_0, window_bounds = array<i64: 1, 16, 128>}, {pipeline_mode = #tpu.pipeline_mode<synchronous>, transform_indices = @transform_1, window_bounds = array<i64: 384, 128>}, {pipeline_mode = #tpu.pipeline_mode<synchronous>, transform_indices = @transform_2, window_bounds = array<i64: 1, 128>}, {pipeline_mode = #tpu.pipeline_mode<synchronous>, transform_indices = @transform_3, window_bounds = array<i64: 1, 128>}, {pipeline_mode = #tpu.pipeline_mode<synchronous>, transform_indices = @transform_4, window_bounds = array<i64: 384, 128>}, {pipeline_mode = #tpu.pipeline_mode<synchronous>, transform_indices = @transform_5, window_bounds = array<i64: 1, 128>}, {pipeline_mode = #tpu.pipeline_mode<synchronous>, transform_indices = @transform_6, window_bounds = array<i64: 1, 128>}, {transform_indices = @transform_7, window_bounds = array<i64: 1, 16, 128>}]} {
    %cst = arith.constant 0.000000e+00 : bf16
    %0 = vector.broadcast %cst : bf16 to vector<1x1x128xbf16>
    %c0 = arith.constant 0 : index
    %c0_0 = arith.constant 0 : index
    %c0_1 = arith.constant 0 : index
    %1 = vector.load %arg9[%c0, %c0_0, %c0_1] : memref<1x16x384xbf16, #tpu.memory_space<vmem>>, vector<1x1x128xbf16>
    tpu.vector_store %arg9[%c0, %c0_0, %c0_1], %0 {strides = array<i32>} : memref<1x16x384xbf16, #tpu.memory_space<vmem>>, vector<1x1x128xbf16>,
    %c0_2 = arith.constant 0 : index
    %c15 = arith.constant 15 : index
    %c256 = arith.constant 256 : index
    %2 = vector.load %arg9[%c0_2, %c15, %c256] : memref<1x16x384xbf16, #tpu.memory_space<vmem>>, vector<1x1x128xbf16>
    tpu.vector_store %arg9[%c0_2, %c15, %c256], %0 {strides = array<i32>} : memref<1x16x384xbf16, #tpu.memory_space<vmem>>, vector<1x1x128xbf16>,
    %c0_3 = arith.constant 0 : index
    %c0_4 = arith.constant 0 : index
    %c0_5 = arith.constant 0 : index
    %3 = vector.load %arg1[%c0_3, %c0_4, %c0_5] : memref<1x16x128xf32, #tpu.memory_space<vmem>>, vector<1x16x128xf32>
    %c0_6 = arith.constant 0 : index
    %c0_7 = arith.constant 0 : index
    %4 = vector.load %arg3[%c0_6, %c0_7] : memref<1x128xf32, #tpu.memory_space<vmem>>, vector<1x128xf32>
    %5 = vector.shape_cast %4 : vector<1x128xf32> to vector<128xf32>
    %6 = vector.shape_cast %5 : vector<128xf32> to vector<1x1x128xf32>
    %7 = vector.broadcast %6 : vector<1x1x128xf32> to vector<1x16x128xf32>
    %8 = arith.mulf %3, %7 : vector<1x16x128xf32>
    %c0_8 = arith.constant 0 : index
    %c0_9 = arith.constant 0 : index
    %9 = vector.load %arg4[%c0_8, %c0_9] : memref<1x128xf32, #tpu.memory_space<vmem>>, vector<1x128xf32>
    %10 = vector.shape_cast %9 : vector<1x128xf32> to vector<128xf32>
    %11 = vector.shape_cast %10 : vector<128xf32> to vector<1x1x128xf32>
    %12 = vector.broadcast %11 : vector<1x1x128xf32> to vector<1x16x128xf32>
    %13 = arith.addf %8, %12 : vector<1x16x128xf32>
    %cst_10 = arith.constant 0.000000e+00 : f32
    %14 = vector.broadcast %cst_10 : f32 to vector<1x16x128xf32>
    %15 = arith.maximumf %13, %14 : vector<1x16x128xf32>
    %16 = arith.truncf %15 : vector<1x16x128xf32> to vector<1x16x128xbf16>
    %c0_11 = arith.constant 0 : index
    %c0_12 = arith.constant 0 : index
    %c128 = arith.constant 128 : index
    %17 = vector.load %arg9[%c0_11, %c0_12, %c128] : memref<1x16x384xbf16, #tpu.memory_space<vmem>>, vector<1x16x128xbf16>
    tpu.vector_store %arg9[%c0_11, %c0_12, %c128], %16 {strides = array<i32>} : memref<1x16x384xbf16, #tpu.memory_space<vmem>>, vector<1x16x128xbf16>,
    %18 = vector.extract_strided_slice %16 {offsets = [0, 0, 0], sizes = [1, 15, 128], strides = [1, 1, 1]} : vector<1x16x128xbf16> to vector<1x15x128xbf16>
    %c0_13 = arith.constant 0 : index
    %c1 = arith.constant 1 : index
    %c0_14 = arith.constant 0 : index
    %19 = vector.load %arg9[%c0_13, %c1, %c0_14] : memref<1x16x384xbf16, #tpu.memory_space<vmem>>, vector<1x15x128xbf16>
    tpu.vector_store %arg9[%c0_13, %c1, %c0_14], %18 {strides = array<i32>} : memref<1x16x384xbf16, #tpu.memory_space<vmem>>, vector<1x15x128xbf16>,
    %20 = vector.extract_strided_slice %16 {offsets = [0, 1, 0], sizes = [1, 15, 128], strides = [1, 1, 1]} : vector<1x16x128xbf16> to vector<1x15x128xbf16>
    %c0_15 = arith.constant 0 : index
    %c0_16 = arith.constant 0 : index
    %c256_17 = arith.constant 256 : index
    %21 = vector.load %arg9[%c0_15, %c0_16, %c256_17] : memref<1x16x384xbf16, #tpu.memory_space<vmem>>, vector<1x15x128xbf16>
    tpu.vector_store %arg9[%c0_15, %c0_16, %c256_17], %20 {strides = array<i32>} : memref<1x16x384xbf16, #tpu.memory_space<vmem>>, vector<1x15x128xbf16>,
    %c0_18 = arith.constant 0 : index
    %c0_19 = arith.constant 0 : index
    %c0_20 = arith.constant 0 : index
    %22 = vector.load %arg9[%c0_18, %c0_19, %c0_20] : memref<1x16x384xbf16, #tpu.memory_space<vmem>>, vector<1x16x384xbf16>
    %23 = vector.shape_cast %22 : vector<1x16x384xbf16> to vector<16x384xbf16>
    %c0_21 = arith.constant 0 : index
    %c0_22 = arith.constant 0 : index
    %24 = vector.load %arg2[%c0_21, %c0_22] : memref<384x128xbf16, #tpu.memory_space<vmem>>, vector<384x128xbf16>
    %cst_23 = arith.constant dense<0.000000e+00> : vector<16x128xf32>
    %25 = tpu.matmul %23, %24, %cst_23 {dimension_numbers = #tpu.dot_dimension_numbers<[1], [0], [0], [1], [0, 0, 1, 1], [], []>} : vector<16x384xbf16>, vector<384x128xbf16>, vector<16x128xf32> -> vector<16x128xf32>
    %26 = vector.shape_cast %25 : vector<16x128xf32> to vector<1x16x128xf32>
    %c0_24 = arith.constant 0 : index
    %c0_25 = arith.constant 0 : index
    %27 = vector.load %arg6[%c0_24, %c0_25] : memref<1x128xf32, #tpu.memory_space<vmem>>, vector<1x128xf32>
    %28 = vector.shape_cast %27 : vector<1x128xf32> to vector<128xf32>
    %29 = vector.shape_cast %28 : vector<128xf32> to vector<1x1x128xf32>
    %30 = vector.broadcast %29 : vector<1x1x128xf32> to vector<1x16x128xf32>
    %31 = arith.mulf %26, %30 : vector<1x16x128xf32>
    %c0_26 = arith.constant 0 : index
    %c0_27 = arith.constant 0 : index
    %32 = vector.load %arg7[%c0_26, %c0_27] : memref<1x128xf32, #tpu.memory_space<vmem>>, vector<1x128xf32>
    %33 = vector.shape_cast %32 : vector<1x128xf32> to vector<128xf32>
    %34 = vector.shape_cast %33 : vector<128xf32> to vector<1x1x128xf32>
    %35 = vector.broadcast %34 : vector<1x1x128xf32> to vector<1x16x128xf32>
    %36 = arith.addf %31, %35 : vector<1x16x128xf32>
    %cst_28 = arith.constant 0.000000e+00 : f32
    %37 = vector.broadcast %cst_28 : f32 to vector<1x16x128xf32>
    %38 = arith.maximumf %36, %37 : vector<1x16x128xf32>
    %39 = arith.truncf %38 : vector<1x16x128xf32> to vector<1x16x128xbf16>
    %c0_29 = arith.constant 0 : index
    %c0_30 = arith.constant 0 : index
    %c128_31 = arith.constant 128 : index
    %40 = vector.load %arg9[%c0_29, %c0_30, %c128_31] : memref<1x16x384xbf16, #tpu.memory_space<vmem>>, vector<1x16x128xbf16>
    tpu.vector_store %arg9[%c0_29, %c0_30, %c128_31], %39 {strides = array<i32>} : memref<1x16x384xbf16, #tpu.memory_space<vmem>>, vector<1x16x128xbf16>,
    %41 = vector.extract_strided_slice %39 {offsets = [0, 0, 0], sizes = [1, 15, 128], strides = [1, 1, 1]} : vector<1x16x128xbf16> to vector<1x15x128xbf16>
    %c0_32 = arith.constant 0 : index
    %c1_33 = arith.constant 1 : index
    %c0_34 = arith.constant 0 : index
    %42 = vector.load %arg9[%c0_32, %c1_33, %c0_34] : memref<1x16x384xbf16, #tpu.memory_space<vmem>>, vector<1x15x128xbf16>
    tpu.vector_store %arg9[%c0_32, %c1_33, %c0_34], %41 {strides = array<i32>} : memref<1x16x384xbf16, #tpu.memory_space<vmem>>, vector<1x15x128xbf16>,
    %43 = vector.extract_strided_slice %39 {offsets = [0, 1, 0], sizes = [1, 15, 128], strides = [1, 1, 1]} : vector<1x16x128xbf16> to vector<1x15x128xbf16>
    %c0_35 = arith.constant 0 : index
    %c0_36 = arith.constant 0 : index
    %c256_37 = arith.constant 256 : index
    %44 = vector.load %arg9[%c0_35, %c0_36, %c256_37] : memref<1x16x384xbf16, #tpu.memory_space<vmem>>, vector<1x15x128xbf16>
    tpu.vector_store %arg9[%c0_35, %c0_36, %c256_37], %43 {strides = array<i32>} : memref<1x16x384xbf16, #tpu.memory_space<vmem>>, vector<1x15x128xbf16>,
    %c0_38 = arith.constant 0 : index
    %c0_39 = arith.constant 0 : index
    %c0_40 = arith.constant 0 : index
    %45 = vector.load %arg9[%c0_38, %c0_39, %c0_40] : memref<1x16x384xbf16, #tpu.memory_space<vmem>>, vector<1x16x384xbf16>
    %46 = vector.shape_cast %45 : vector<1x16x384xbf16> to vector<16x384xbf16>
    %c0_41 = arith.constant 0 : index
    %c0_42 = arith.constant 0 : index
    %47 = vector.load %arg5[%c0_41, %c0_42] : memref<384x128xbf16, #tpu.memory_space<vmem>>, vector<384x128xbf16>
    %cst_43 = arith.constant dense<0.000000e+00> : vector<16x128xf32>
    %48 = tpu.matmul %46, %47, %cst_43 {dimension_numbers = #tpu.dot_dimension_numbers<[1], [0], [0], [1], [0, 0, 1, 1], [], []>} : vector<16x384xbf16>, vector<384x128xbf16>, vector<16x128xf32> -> vector<16x128xf32>
    %49 = vector.shape_cast %48 : vector<16x128xf32> to vector<1x16x128xf32>
    %50 = arith.addf %49, %3 : vector<1x16x128xf32>
    %c0_44 = arith.constant 0 : index
    %c0_45 = arith.constant 0 : index
    %c0_46 = arith.constant 0 : index
    %51 = vector.load %arg8[%c0_44, %c0_45, %c0_46] : memref<1x16x128xf32, #tpu.memory_space<vmem>>, vector<1x16x128xf32>
    tpu.vector_store %arg8[%c0_44, %c0_45, %c0_46], %50 {strides = array<i32>} : memref<1x16x128xf32, #tpu.memory_space<vmem>>, vector<1x16x128xf32>,
    return
  }
  func.func @transform_0(%arg0: i32) -> (i32, i32, i32) {
    %c0_i32 = arith.constant 0 : i32
    %c0_i32_0 = arith.constant 0 : i32
    %c0_i32_1 = arith.constant 0 : i32
    return %arg0, %c0_i32, %c0_i32_0 : i32, i32, i32
  }
  func.func @transform_1(%arg0: i32) -> (i32, i32) {
    %c0_i32 = arith.constant 0 : i32
    %c0_i32_0 = arith.constant 0 : i32
    %c0_i32_1 = arith.constant 0 : i32
    return %c0_i32, %c0_i32_0 : i32, i32
  }
  func.func @transform_2(%arg0: i32) -> (i32, i32) {
    %c0_i32 = arith.constant 0 : i32
    %c0_i32_0 = arith.constant 0 : i32
    %c0_i32_1 = arith.constant 0 : i32
    return %c0_i32, %c0_i32_0 : i32, i32
  }
  func.func @transform_3(%arg0: i32) -> (i32, i32) {
    %c0_i32 = arith.constant 0 : i32
    %c0_i32_0 = arith.constant 0 : i32
    %c0_i32_1 = arith.constant 0 : i32
    return %c0_i32, %c0_i32_0 : i32, i32
  }
  func.func @transform_4(%arg0: i32) -> (i32, i32) {
    %c0_i32 = arith.constant 0 : i32
    %c0_i32_0 = arith.constant 0 : i32
    %c0_i32_1 = arith.constant 0 : i32
    return %c0_i32, %c0_i32_0 : i32, i32
  }
  func.func @transform_5(%arg0: i32) -> (i32, i32) {
    %c0_i32 = arith.constant 0 : i32
    %c0_i32_0 = arith.constant 0 : i32
    %c0_i32_1 = arith.constant 0 : i32
    return %c0_i32, %c0_i32_0 : i32, i32
  }
  func.func @transform_6(%arg0: i32) -> (i32, i32) {
    %c0_i32 = arith.constant 0 : i32
    %c0_i32_0 = arith.constant 0 : i32
    %c0_i32_1 = arith.constant 0 : i32
    return %c0_i32, %c0_i32_0 : i32, i32
  }
  func.func @transform_7(%arg0: i32) -> (i32, i32, i32) {
    %c0_i32 = arith.constant 0 : i32
    %c0_i32_0 = arith.constant 0 : i32
    %c0_i32_1 = arith.constant 0 : i32
    return %arg0, %c0_i32, %c0_i32_0 : i32, i32, i32
  }
}

</mosaic_0001>

<bundles_post_ra>
// kernel: tpu_custom_call.1
= control target key start
LH: loop header
LB: loop body
LE: loop exit
PB: predicated region body
PF: predicated region fallthrough
CT: control target
= control target key end

     0   :  { %s1873_s0 = inlined_call_operand.hbm [shape: f32[2,16,128], index: 0, kind: input, shape index: {}]   ;;  %s1874_s1 = inlined_call_operand.hbm [shape: bf16[384,128], index: 1, kind: input, shape index: {}]   ;;  %s1875_s2 = inlined_call_operand.vmem [shape: f32[1,128], index: 2, kind: input, shape index: {}]   ;;  %s1876_s3 = inlined_call_operand.vmem [shape: f32[1,128], index: 3, kind: input, shape index: {}]   ;;  %s1877_s4 = inlined_call_operand.hbm [shape: bf16[384,128], index: 4, kind: input, shape index: {}]   ;;  %s1878_s5 = inlined_call_operand.vmem [shape: f32[1,128], index: 5, kind: input, shape index: {}]   ;;  %s1879_s6 = inlined_call_operand.vmem [shape: f32[1,128], index: 6, kind: input, shape index: {}]   ;;  %s1880_s7 = inlined_call_operand.hbm [shape: f32[2,16,128], index: 7, kind: output, shape index: {}]  }
   0x1   :  { %1881 = sst [smem:[#allocation13_spill]] %s1874_s1 }
   0x2   :  { %12 = vsyncpa [#allocation4], 0 }
   0x3   :  { %14 = vsyncpa [#allocation4 + $0x1], 0 }
   0x4   :  { %15 = vsyncpa [#allocation7], 0 }
   0x5   :  { %16 = vsyncpa [#allocation5], 0 }
   0x6   :  { %18 = vsyncpa [#allocation5 + $0x1], 0  ;;  %s1663_s24 = smov 0   ;;  %s1665_s25 = smov 0  }
   0x7   :  { %s1667_s26 = smov 0   ;;  %s1669_s27 = smov 0  }
   0x8 LB: > { %s1684_s28 = sadd.s32 4294967295, %s1613_s27   ;;  %s1086_s29 = sadd.s32 4294967294, %s1613_s27   ;;  %s1613_s27 = sphi %s1669_s27, %s1902_s27   ;;  %s1609_s26 = sphi %s1667_s26, %s1901_s26   ;;  %s1605_s25 = sphi %s1665_s25, %s1900_s25   ;;  %s1601_s24 = sphi %s1663_s24, %s1899_s24  }
   0x9   : > { %p44_p0 = scmp.ne.s32.totalorder %s1605_s25, %s1601_s24  ;;  %p45_p1 = scmp.eq.s32.totalorder %s1684_s28, 0 }
   0xa   : > { %p194_p2 = scmp.eq.s32.totalorder %s1684_s28, 1  ;;  %p200_p3 = scmp.eq.s32.totalorder %s1086_s29, 1 }
   0xb   : > { %p1693_p4 = por %p45_p1, %p44_p0  ;;  %p1087_p5 = scmp.ge.s32.totalorder %s1613_s27, 1 }
   0xc   : > { %p1698_p6 = por %p200_p3, %p44_p0  ;;  %p207_p7 = scmp.lt.s32.totalorder %s1613_s27, 3 }
   0xd   : > { %s1884_s1 = sld [smem:[#allocation13_spill]]  ;;  %s1615_s13 = smov [#allocation6]  }
   0xe   : > { %p1706_p8 = pnand %p1087_p5, %p207_p7  ;;  %s220_s14 = sshll.u32 %s1615_s13, 4  ;;  %s221_s14 = int_to_ptr.vmem [resolvable:$true] %s220_s14 }
   0xf   : > { %s238_s17 = sshll.u32 %s1877_s4, 4  ;;  %s1616_s18 = smov 64   ;;  %s239_s17 = int_to_ptr.hbm [resolvable:$true] %s238_s17 }
  0x10   : > { %p1388_p9 = pneg %p1706_p8  ;;  %s1617_s19 = smov 4  }
  0x11   : > { %s1618_s20 = smov [#allocation8]   ;;  %s1719_s22 = sadd.s32 1, %s1613_s27  }
  0x12   : > { %p1389_p10 = pnand %p1388_p9, %p45_p1  ;;  %s240_s21 = sshll.u32 %s1618_s20, 4  ;;  %s241_s21 = int_to_ptr.vmem [resolvable:$true] %s240_s21 }
  0x13   : > { %s218_s11 = sshll.u32 %s1884_s1, 4  ;;  %s31_s23 = sadd.s32 1, %s1609_s26  ;;  %s219_s11 = int_to_ptr.hbm [resolvable:$true] %s218_s11 }
  0x14   : > { %1391 = dma.hbm_to_vmem [thread:$0]  (!%p1389_p10), %s219_s11, 3072, %s221_s14, [#allocation7], %s1616_s18, %s1616_s18, %s1617_s19  }
  0x15   : > { %1394 = dma.hbm_to_vmem [thread:$0]  (!%p1389_p10), %s239_s17, 3072, %s241_s21, [#allocation7], %s1616_s18, %s1616_s18, %s1617_s19  }
  0x16   : > { %s28_s29 = ssub.s32 %s1613_s27, %s1719_s22  ;;  %p38_p12 = scmp.ne.s32.totalorder %s1609_s26, %s1605_s25 }
  0x17   : > { %p29_p13 = scmp.eq.s32.totalorder %s28_s29, 0  ;;  %p39_p0 = scmp.eq.s32.totalorder %s1613_s27, 0 }
  0x18   : > { %p1729_p3 = por %p194_p2, %p38_p12  ;;  %p1405_p5 = scmp.lt.s32.totalorder %s1613_s27, 2 }
  0x19   : > { %s1735_s10 = scalar_select %p29_p13, %s1609_s26, %s31_s23  }
  0x1a   : > { %p40_p7 = por %p39_p0, %p38_p12  ;;  %s260_s11 = sand.u32 1, %s1609_s26  }
  0x1b   : > { %s1091_s13 = sshll.u32 %s260_s11, 4  ;;  %s1320_s14 = sshll.u32 %s1613_s27, 4 }
  0x1c   : > { %s269_s17 = scalar_lea.hbm %s1873_s0, %s1320_s14  ;;  %s264_s18 = scalar_lea.vmem [#allocation3], %s1091_s13 }
  0x1d   : > { %s272_s19 = sshll.u32 %s264_s18, 4  ;;  %s270_s20 = sshll.u32 %s269_s17, 4  ;;  %s273_s19 = int_to_ptr.vmem [resolvable:$true] %s272_s19  ;;  %s271_s20 = int_to_ptr.hbm [resolvable:$true] %s270_s20 }
  0x1e   : > { %p1742_p2 = pnand %p1405_p5, %p40_p7  ;;  %s261_s23 = scalar_lea.sflag [#allocation4], %s260_s11 }
  0x1f   : > { %s1513_s29 = sshra.s32 %s271_s20, 4  ;;  %s1520_s15 = scalar_lea.hbm %s1873_s0, 32  ;;  %s1514_s29 = int_to_ptr.hbm [resolvable:$true] %s1513_s29 }
  0x20   : > { %s1515_s1 = scalar_lea.hbm %s1514_s29, 16  ;;  %p1517_p10 = pneg %p1742_p2 }
  0x21   : > { %p1516_p9 = scmp.ne.s32.totalorder %s1514_s29, %s1515_s1  ;;  %p1521_p0 = scmp.lt.s32.totalorder %s1514_s29, %s1873_s0 }
  0x22   : > { %p1522_p5 = scmp.lt.s32.totalorder %s1520_s15, %s1515_s1 }
  0x23   : > { %p1518_p12 = pnand %p1517_p10, %p1516_p9 }
  0x24   : > { %p1523_p7 = por %p1522_p5, %p1521_p0 }
  0x25   : > { %p1519_p13 = pneg %p1518_p12 }
  0x27   : > { %p1524_p11 = pnand %p1523_p7, %p1519_p13 }
  0x29   : > { %1527 = shalt.err (!%p1524_p11)
}
  0x2a   : > { %s1619_s11 = smov 128   ;;  %s1620_s18 = smov 8  }
  0x2b   : > { %1398 = dma.hbm_to_vmem [thread:$0]  (!%p1742_p2), %s271_s20, 256, %s273_s19, %s261_s23, %s1619_s11, %s1619_s11, %s1620_s18  }
  0x2c   : > { %284 = sbr.rel (%p1706_p8) target bundleno = 405 (0x195), region = 48  ;;  %s1759_s14 = sand.u32 (!%p1706_p8), 1, %s1605_s25  }
  0x2d   : > { %s1095_s29 = sshll.u32 (!%p1706_p8), %s1759_s14, 4  ;;  %s287_s1 = scalar_lea.sflag (!%p1706_p8), [#allocation4], %s1759_s14 }
  0x2e   : > { %s290_s13 = scalar_lea.vmem (!%p1706_p8), [#allocation3], %s1095_s29 }
  0x31   : > { %1588 = dma.done.wait (%p1693_p4), %s287_s1, 256  }
  0x32   : > { %1590 = vsyncadd (%p1693_p4), %s287_s1, 4294967040 }
  0x33   : > { %1592 = dma.done.wait (%p45_p1), [#allocation7], 6144  }
  0x34   : > { %1594 = vsyncadd (%p45_p1), [#allocation7], 4294961152  ;;  %v1331_v0 = vld [vmem:[#allocation6 + $0x38] sm:$0xff]  ;;  %v1330_v3 = vld [vmem:[#allocation6 + $0x30] sm:$0xff]  ;;  %vm333_vm0 = vcmask 1040384   ;;  %vm339_vm2 = vcmask 1043459  }
  0x35   : > { %v1339_v1 = vld [vmem:[#allocation6 + $0x78] sm:$0xff]  ;;  %623 = vmatpush.bf16.msra.mxu0 %v1331_v0  ;;  %v1338_v4 = vld [vmem:[#allocation6 + $0x70] sm:$0xff]  ;;  %vm334_vm1 = vsmask.f32 256  ;;  %vm340_vm3 = vsmask.f32 7950 }
  0x36   : > { %v1347_v2 = vld [vmem:[#allocation6 + $0xb8] sm:$0xff]  ;;  %637 = vmatpush.bf16.msra.mxu1 %v1339_v1  ;;  %v1346_v5 = vld [vmem:[#allocation6 + $0xb0] sm:$0xff]  ;;  %v1329_v6 = vld [vmem:[#allocation6 + $0x28] sm:$0xff]  ;;  %vm365_vm6 = vsmask.f32 4368  ;;  %vm385_vm7 = vcmask 1043456  }
  0x37   : > { %651 = vmatpush.bf16.msra.mxu2 %v1347_v2  ;;  %v1337_v7 = vld [vmem:[#allocation6 + $0x68] sm:$0xff]  ;;  %vm335_vm4 = vmand %vm333_vm0, %vm334_vm1  ;;  %v1328_v10 = vld [vmem:[#allocation6 + $0x20] sm:$0xff]  ;;  %vm386_vm8 = vsmask.f32 7938  ;;  %vm392_vm10 = vsmask.f32 3328 }
  0x38   : > { %v1345_v8 = vld [vmem:[#allocation6 + $0xa8] sm:$0xff]  ;;  %vm1774_vm5 = vmand %vm339_vm2, %vm340_vm3  ;;  %v1336_v11 = vld [vmem:[#allocation6 + $0x60] sm:$0xff]  ;;  %vm393_vm11 = vsmask.f32 7440  ;;  %s1375_s17 = sshll.u32 %s1684_s28, 4  ;;  %s979_s28 = scalar_lea.sflag [#allocation5], %s1759_s14 }
  0x39   : > { %624 = vmatpush.bf16.msra.mxu0 %v1330_v3  ;;  %v336_v12 = vld [vmem:[#allocation2] sm:$0x1]  ;;  %v1778_v13 = vld [vmem:[%s290_s13] sm:$0xff]  ;;  %v342_v21 = vld [vmem:[#allocation2 + $0x14] sm:$0x8]  ;;  %s990_s1 = scalar_lea.hbm %s1880_s7, %s1375_s17  ;;  %s1563_s23 = scalar_lea.hbm %s1880_s7, 32 }
  0x3a   : > { %638 = vmatpush.bf16.msra.mxu1 %v1338_v4  ;;  %v1780_v14 = vld [vmem:[%s290_s13 + $0x8] sm:$0xff]  ;;  %v1344_v15 = vld [vmem:[#allocation6 + $0xa0] sm:$0xff]  ;;  %v337_v16 = vsel %vm335_vm4, 0, %v336_v12  ;;  %v343_v22 = vsel %vm1774_vm5, 0, %v342_v21  ;;  %v1326_v32 = vld [vmem:[#allocation6 + $0x10] sm:$0xff]  ;;  %s331_s13 = scalar_lea.vmem [#allocation9], %s1095_s29 }
  0x3b   : > { %652 = vmatpush.bf16.msra.mxu2 %v1346_v5  ;;  %v1449_v17 = vld [vmem:[%s1875_s2] ss:$0 sm:$0xff]  ;;  %338 = vst [vmem:[#allocation2] sm:$0x1] %v337_v16  ;;  %v1327_v25 = vld [vmem:[#allocation6 + $0x18] sm:$0xff]  ;;  %v1334_v33 = vld [vmem:[#allocation6 + $0x50] sm:$0xff] }
  0x3c   : > { %v1450_v18 = vld [vmem:[%s1876_s3] ss:$0 sm:$0xff]  ;;  %v351_v19 = vmul.f32 %v1449_v17, %v1778_v13  ;;  %v352_v20 = vmul.f32 %v1449_v17, %v1780_v14  ;;  %344 = vst [vmem:[#allocation2 + $0x14] sm:$0x8] %v343_v22  ;;  %v1335_v26 = vld [vmem:[#allocation6 + $0x58] sm:$0xff]  ;;  %v1342_v34 = vld [vmem:[#allocation6 + $0x90] sm:$0xff] }
  0x3d   : > { %625 = vmatpush.bf16.msra.mxu0 %v1329_v6  ;;  %v1343_v27 = vld [vmem:[#allocation6 + $0x98] sm:$0xff]  ;;  %vm1793_vm9 = vmor %vm334_vm1, %vm365_vm6  ;;  %v1325_v45 = vld [vmem:[#allocation6 + $0x8] sm:$0xff]  ;;  %s991_s30 = sshll.u32 %s331_s13, 4  ;;  %s993_s12 = sshll.u32 %s990_s1, 4  ;;  %s992_s30 = int_to_ptr.vmem [resolvable:$true] %s991_s30  ;;  %s994_s12 = int_to_ptr.hbm [resolvable:$true] %s993_s12 }
  0x3e   : > { %639 = vmatpush.bf16.msra.mxu1 %v1337_v7  ;;  %v357_v23 = vadd.f32 %v1450_v18, %v351_v19  ;;  %v358_v24 = vadd.f32 %v1450_v18, %v352_v20  ;;  %vm1798_vm12 = vmand %vm385_vm7, %vm386_vm8  ;;  %v1333_v46 = vld [vmem:[#allocation6 + $0x48] sm:$0xff]  ;;  %v1324_v57 = vld [vmem:[#allocation6] sm:$0xff]  ;;  %s1557_s19 = sshra.s32 %s994_s12, 4  ;;  %s1558_s19 = int_to_ptr.hbm [resolvable:$true] %s1557_s19 }
  0x3f   : > { %653 = vmatpush.bf16.msra.mxu2 %v1345_v8  ;;  %v1341_v50 = vld [vmem:[#allocation6 + $0x88] sm:$0xff]  ;;  %vm1804_vm13 = vmor %vm392_vm10, %vm393_vm11  ;;  %v1332_v63 = vld [vmem:[#allocation6 + $0x40] sm:$0xff]  ;;  %s1559_s20 = scalar_lea.hbm %s1558_s19, 16  ;;  %p1564_p11 = scmp.lt.s32.totalorder %s1558_s19, %s1880_s7 }
  0x40   : > { %v359_v28 = vmax.f32 %v357_v23, 0.0  ;;  %v360_v29 = vmax.f32 %v358_v24, 0.0  ;;  %vm1814_vm14 = vmand %vm385_vm7, %vm392_vm10  ;;  %v1340_v2 = vld [vmem:[#allocation6 + $0x80] sm:$0xff]  ;;  %v1365_v16 = vld [vmem:[#allocation8 + $0x70] sm:$0xff]  ;;  %p1560_p1 = scmp.ne.s32.totalorder %s1558_s19, %s1559_s20  ;;  %p1565_p2 = scmp.lt.s32.totalorder %s1563_s23, %s1559_s20 }
  0x41   : > { %626 = vmatpush.bf16.msra.mxu0 %v1328_v10  ;;  %v1358_v17 = vld [vmem:[#allocation8 + $0x38] sm:$0xff]  ;;  %v1364_v18 = vld [vmem:[#allocation8 + $0x68] sm:$0xff]  ;;  %v1357_v20 = vld [vmem:[#allocation8 + $0x30] sm:$0xff] }
  0x42   : > { %640 = vmatpush.bf16.msra.mxu1 %v1336_v11  ;;  %v361_v30 = vpack.c.bf16 %v359_v28, %v359_v28  ;;  %v362_v31 = vpack.c.bf16 %v360_v29, %v360_v29  ;;  %v388_v47 = vld [vmem:[#allocation2] sm:$0xf]  ;;  %932 = vmatpush.bf16.msra.mxu3 %v1358_v17  ;;  %v1374_v19 = vld [vmem:[#allocation8 + $0xb8] sm:$0xff]  ;;  %v1363_v21 = vld [vmem:[#allocation8 + $0x60] sm:$0xff]  ;;  %p1561_p4 = pnand %p1560_p1, %p1729_p3  ;;  %p1566_p9 = por %p1565_p2, %p1564_p11 }
  0x43   : > { %654 = vmatpush.bf16.msra.mxu2 %v1344_v15  ;;  %v408_v62 = vld [vmem:[#allocation2 + $0x14] sm:$0xf]  ;;  %v1373_v22 = vld [vmem:[#allocation8 + $0xb0] sm:$0xff]  ;;  %v1356_v23 = vld [vmem:[#allocation8 + $0x28] sm:$0xff] }
  0x44   : > { %v368_v35 = vshrl.u32 %v361_v30, 16  ;;  %v371_v36 = vshll.u32 %v361_v30, 16  ;;  %v376_v37 = vshrl.u32 %v362_v31, 16  ;;  %v379_v38 = vshll.u32 %v362_v31, 16  ;;  %363 = vst [vmem:[#allocation2 + $0x4] sm:$0xf] %v361_v30  ;;  %p1562_p8 = pneg %p1561_p4 }
  0x45   : > { %627 = vmatpush.bf16.msra.mxu0 %v1327_v25  ;;  %364 = vst [vmem:[#allocation2 + $0x10] sm:$0xf] %v362_v31  ;;  %v1366_v15 = vld [vmem:[#allocation8 + $0x78] sm:$0xff]  ;;  %v1372_v25 = vld [vmem:[#allocation8 + $0xa8] sm:$0xff]  ;;  %v1371_v28 = vld [vmem:[#allocation8 + $0xa0] sm:$0xff] }
  0x46   : > { %641 = vmatpush.bf16.msra.mxu1 %v1335_v26  ;;  %v370_v40 = vrot.slane %v368_v35, 7  ;;  %v378_v41 = vrot.slane %v376_v37, 7  ;;  %v395_v43 = vrot.slane %v368_v35, 4  ;;  %v396_v44 = vrot.slane %v371_v36, 5  ;;  %933 = vmatpush.bf16.msra.mxu3 %v1357_v20  ;;  %v1362_v24 = vld [vmem:[#allocation8 + $0x58] sm:$0xff]  ;;  %v1355_v26 = vld [vmem:[#allocation8 + $0x20] sm:$0xff]  ;;  %p1567_p10 = pnand %p1566_p9, %p1562_p8 }
  0x47   : > { %655 = vmatpush.bf16.msra.mxu2 %v1343_v27  ;;  %v399_v48 = vrot.slane %v379_v38, 5  ;;  %v401_v49 = vrot.slane %v376_v37, 4  ;;  %v1361_v27 = vld [vmem:[#allocation8 + $0x50] sm:$0xff]  ;;  %v1354_v29 = vld [vmem:[#allocation8 + $0x18] sm:$0xff]  ;;  %v1360_v30 = vld [vmem:[#allocation8 + $0x48] sm:$0xff] }
  0x48   : > { %v373_v51 = vor.u32 %v371_v36, %v370_v40  ;;  %v374_v52 = vrot.slane %v370_v40, 4  ;;  %v381_v53 = vor.u32 %v379_v38, %v378_v41  ;;  %v397_v54 = vor.u32 %v396_v44, %v395_v43  ;;  %v1370_v31 = vld [vmem:[#allocation8 + $0x98] sm:$0xff]  ;;  %v1352_v37 = vld [vmem:[#allocation8 + $0x8] sm:$0xff]  ;;  %v1351_v41 = vld [vmem:[#allocation8] sm:$0xff] }
  0x49   : > { %628 = vmatpush.bf16.msra.mxu0 %v1326_v32  ;;  %v402_v56 = vor.u32 %v401_v49, %v399_v48  ;;  %v1353_v32 = vld [vmem:[#allocation8 + $0x10] sm:$0xff]  ;;  %v1368_v40 = vld [vmem:[#allocation8 + $0x88] sm:$0xff]  ;;  %v1367_v44 = vld [vmem:[#allocation8 + $0x80] sm:$0xff] }
  0x4a   : > { %642 = vmatpush.bf16.msra.mxu1 %v1334_v33  ;;  %v382_v58 = vsel %vm1793_vm9, %v374_v52, %v381_v53  ;;  %v389_v59 = vsel %vm1798_vm12, %v373_v51, %v388_v47  ;;  %v398_v60 = vrot.slane %v397_v54, 4  ;;  %934 = vmatpush.bf16.msra.mxu3 %v1356_v23  ;;  %v1359_v33 = vld [vmem:[#allocation8 + $0x40] sm:$0xff]  ;;  %v1451_v43 = vld [vmem:[%s1878_s5] ss:$0 sm:$0xff] }
  0x4b   : > { %656 = vmatpush.bf16.msra.mxu2 %v1342_v34  ;;  %390 = vst [vmem:[#allocation2] sm:$0xf] %v389_v59  ;;  %v1321_v0 = vld [vmem:[#allocation2 + $0x4] sm:$0xf]  ;;  %v403_v1 = vrot.slane %v402_v56, 4  ;;  %v1369_v34 = vld [vmem:[#allocation8 + $0x90] sm:$0xff] }
  0x4c   : > { %391 = vst [vmem:[#allocation2 + $0xc] sm:$0xf] %v382_v58  ;;  %v1103_v3 = vld [vmem:[#allocation2 + $0xc] sm:$0xf0]  ;;  %v400_v4 = vsel %vm1804_vm13, %v398_v60, %v399_v48  ;;  %v1452_v47 = vld [vmem:[%s1879_s6] ss:$0 sm:$0xff] }
  0x4d   : > { %629 = vmatpush.bf16.msra.mxu0 %v1325_v45  ;;  %406 = vst [vmem:[#allocation2 + $0x8] sm:$0xf] %v400_v4  ;;  %v409_v5 = vsel %vm1814_vm14, %v403_v1, %v408_v62  ;;  %v1106_v6 = vor.u32 %v1321_v0, %v1103_v3 }
  0x4e   : > { %643 = vmatpush.bf16.msra.mxu1 %v1333_v46  ;;  %410 = vst [vmem:[#allocation2 + $0x14] sm:$0xf] %v409_v5  ;;  %935 = vmatpush.bf16.msra.mxu3 %v1355_v26 }
  0x4f   : > { %657 = vmatpush.bf16.msra.mxu2 %v1341_v50 }
  0x51   : > { %630 = vmatpush.bf16.msra.mxu0 %v1324_v57 }
  0x52   : > { %644 = vmatpush.bf16.msra.mxu1 %v1332_v63  ;;  %v1101_v7 = vld [vmem:[#allocation2] sm:$0xf]  ;;  %936 = vmatpush.bf16.msra.mxu3 %v1354_v29 }
  0x53   : > { %658 = vmatpush.bf16.msra.mxu2 %v1340_v2  ;;  %v1322_v8 = vld [vmem:[#allocation2 + $0x8] sm:$0xf0]  ;;  %v701_v2 = vld [vmem:[#allocation2] sm:$0xf] }
  0x54   : > { %v1102_v9 = vor.u32 %v1322_v8, %v1101_v7  ;;  %v1109_v10 = vld [vmem:[#allocation2 + $0x8] sm:$0xf] }
  0x55   : > { %645 = vmatmul.bf16.vlgmr.msra.gmra.mxu1 %v1106_v6  ;;  %v1323_v11 = vld [vmem:[#allocation2 + $0x10] sm:$0xf0]  ;;  %946 = vmatpush.bf16.msrb.mxu0 %v1366_v15 }
  0x56   : > { %631 = vmatmul.bf16.vlgmr.msra.gmra.mxu0 %v1102_v9  ;;  %v1110_v12 = vor.u32 %v1323_v11, %v1109_v10  ;;  %960 = vmatpush.bf16.msrb.mxu1 %v1374_v19  ;;  %v717_v20 = vld [vmem:[#allocation2 + $0x14] sm:$0xf] }
  0x57   : > { %937 = vmatpush.bf16.msra.mxu3 %v1353_v32 }
  0x58   : > { %659 = vmatmul.bf16.vlgmr.msra.gmra.mxu2 %v1110_v12 }
  0x59   : > { %947 = vmatpush.bf16.msrb.mxu0 %v1365_v16 }
  0x5a   : > { %961 = vmatpush.bf16.msrb.mxu1 %v1373_v22 }
  0x5b   : > { %938 = vmatpush.bf16.msra.mxu3 %v1352_v37 }
  0x5d   : > { %948 = vmatpush.bf16.msrb.mxu0 %v1364_v18 }
  0x5e   : > { %962 = vmatpush.bf16.msrb.mxu1 %v1372_v25 }
  0x5f   : > { %939 = vmatpush.bf16.msra.mxu3 %v1351_v41 }
  0x61   : > { %949 = vmatpush.bf16.msrb.mxu0 %v1363_v21 }
  0x62   : > { %963 = vmatpush.bf16.msrb.mxu1 %v1371_v28 }
  0x65   : > { %950 = vmatpush.bf16.msrb.mxu0 %v1362_v24 }
  0x66   : > { %964 = vmatpush.bf16.msrb.mxu1 %v1370_v31 }
  0x69   : > { %951 = vmatpush.bf16.msrb.mxu0 %v1361_v27 }
  0x6a   : > { %965 = vmatpush.bf16.msrb.mxu1 %v1369_v34 }
  0x6d   : > { %952 = vmatpush.bf16.msrb.mxu0 %v1360_v30 }
  0x6e   : > { %966 = vmatpush.bf16.msrb.mxu1 %v1368_v40 }
  0x71   : > { %953 = vmatpush.bf16.msrb.mxu0 %v1359_v33 }
  0x72   : > { %967 = vmatpush.bf16.msrb.mxu1 %v1367_v44 }
  0xd2   : > { %v646_v36 = vpop.f32.mrf.mxu1 }
  0xd3   : > { %v632_v35 = vpop.f32.mrf.mxu0 }
  0xd4   : > { %v647_v38 = vadd.f32 %v646_v36, %v632_v35 }
  0xda   : > { %v648_v50 = vpop.f32.mrf.mxu1 }
  0xdb   : > { %v660_v45 = vpop.f32.mrf.mxu2  ;;  %v634_v49 = vpop.f32.mrf.mxu0 }
  0xdc   : > { %v661_v46 = vadd.f32 %v660_v45, %v647_v38  ;;  %v649_v53 = vadd.f32 %v648_v50, %v634_v49 }
  0xde   : > { %v669_v48 = vmul.f32 %v1451_v43, %v661_v46 }
  0xe0   : > { %v675_v51 = vadd.f32 %v1452_v47, %v669_v48 }
  0xe2   : > { %v677_v52 = vmax.f32 %v675_v51, 0.0 }
  0xe3   : > { %v662_v54 = vpop.f32.mrf.mxu2 }
  0xe4   : > { %v679_v56 = vpack.c.bf16 %v677_v52, %v677_v52  ;;  %v663_v57 = vadd.f32 %v662_v54, %v649_v53 }
  0xe6   : > { %681 = vst [vmem:[#allocation2 + $0x4] sm:$0xf] %v679_v56  ;;  %v684_v58 = vshrl.u32 %v679_v56, 16  ;;  %v687_v59 = vshll.u32 %v679_v56, 16  ;;  %v670_v60 = vmul.f32 %v1451_v43, %v663_v57 }
  0xe8   : > { %v686_v62 = vrot.slane %v684_v58, 7  ;;  %v705_v63 = vrot.slane %v684_v58, 4  ;;  %v706_v0 = vrot.slane %v687_v59, 5  ;;  %v676_v1 = vadd.f32 %v1452_v47, %v670_v60 }
  0xea   : > { %v689_v3 = vor.u32 %v687_v59, %v686_v62  ;;  %v678_v4 = vmax.f32 %v676_v1, 0.0  ;;  %v707_v6 = vor.u32 %v706_v0, %v705_v63  ;;  %v690_v16 = vrot.slane %v686_v62, 4 }
  0xec   : > { %v702_v5 = vsel %vm1798_vm12, %v689_v3, %v701_v2  ;;  %v680_v7 = vpack.c.bf16 %v678_v4, %v678_v4  ;;  %v708_v10 = vrot.slane %v707_v6, 4 }
  0xed   : > { %703 = vst [vmem:[#allocation2] sm:$0xf] %v702_v5  ;;  %v1348_v22 = vld [vmem:[#allocation2 + $0x4] sm:$0xf] }
  0xee   : > { %682 = vst [vmem:[#allocation2 + $0x10] sm:$0xf] %v680_v7  ;;  %v692_v8 = vshrl.u32 %v680_v7, 16  ;;  %v695_v9 = vshll.u32 %v680_v7, 16 }
  0xf0   : > { %v694_v11 = vrot.slane %v692_v8, 7  ;;  %v709_v12 = vrot.slane %v695_v9, 5  ;;  %v711_v15 = vrot.slane %v692_v8, 4 }
  0xf2   : > { %v697_v17 = vor.u32 %v695_v9, %v694_v11  ;;  %v710_v18 = vsel %vm1804_vm13, %v708_v10, %v709_v12  ;;  %v712_v19 = vor.u32 %v711_v15, %v709_v12 }
  0xf3   : > { %716 = vst [vmem:[#allocation2 + $0x8] sm:$0xf] %v710_v18 }
  0xf4   : > { %v698_v42 = vsel %vm1793_vm9, %v690_v16, %v697_v17  ;;  %v713_v21 = vrot.slane %v712_v19, 4  ;;  %v1209_v26 = vld [vmem:[#allocation2] sm:$0xf] }
  0xf5   : > { %704 = vst [vmem:[#allocation2 + $0xc] sm:$0xf] %v698_v42  ;;  %v1211_v23 = vld [vmem:[#allocation2 + $0xc] sm:$0xf0] }
  0xf6   : > { %v718_v24 = vsel %vm1814_vm14, %v713_v21, %v717_v20  ;;  %v1214_v25 = vor.u32 %v1348_v22, %v1211_v23 }
  0xf7   : > { %719 = vst [vmem:[#allocation2 + $0x14] sm:$0xf] %v718_v24 }
  0xf8   : > { %954 = vmatmul.bf16.vlgmr.msrb.gmra.mxu0 %v1214_v25 }
  0xfa   : > { %v1217_v28 = vld [vmem:[#allocation2 + $0x8] sm:$0xf] }
  0xfc   : > { %v1349_v55 = vld [vmem:[#allocation2 + $0x8] sm:$0xf0] }
  0xfd   : > { %v1210_v27 = vor.u32 %v1349_v55, %v1209_v26 }
  0xfe   : > { %v1350_v29 = vld [vmem:[#allocation2 + $0x10] sm:$0xf0] }
  0xff   : > { %940 = vmatmul.bf16.vlgmr.msra.gmra.mxu3 %v1210_v27  ;;  %v1218_v39 = vor.u32 %v1350_v29, %v1217_v28 }
 0x101   : > { %968 = vmatmul.bf16.vlgmr.msrb.gmra.mxu1 %v1218_v39 }
 0x175   : > { %v955_v30 = vpop.f32.mrf.mxu0 }
 0x17d   : > { %v957_v35 = vpop.f32.mrf.mxu0 }
 0x17e   : > { %v969_v31 = vpop.f32.mrf.mxu1 }
 0x182   : > { %v941_v32 = vpop.f32.mrf.mxu3 }
 0x183   : > { %v956_v33 = vadd.f32 %v955_v30, %v941_v32 }
 0x185   : > { %v970_v34 = vadd.f32 %v969_v31, %v956_v33 }
 0x186   : > { %v971_v38 = vpop.f32.mrf.mxu1 }
 0x187   : > { %v974_v61 = vadd.f32 %v970_v34, %v1778_v13 }
 0x189   : > { %976 = vst [vmem:[%s331_s13] sm:$0xff] %v974_v61 }
 0x18a   : > { %v943_v36 = vpop.f32.mrf.mxu3 }
 0x18b   : > { %v958_v37 = vadd.f32 %v957_v35, %v943_v36 }
 0x18d   : > { %v972_v40 = vadd.f32 %v971_v38, %v958_v37 }
 0x18f   : > { %v975_v41 = vadd.f32 %v972_v40, %v1780_v14 }
 0x191   : > { %977 = vst [vmem:[%s331_s13 + $0x8] sm:$0xff] %v975_v41 }
 0x192   : > { %1570 = shalt.err (!%p1567_p10)
}
 0x193   : > { %s1621_s14 = smov 128   ;;  %s1622_s17 = smov 8  }
 0x194   : > { %1386 = dma.vmem_to_hbm [thread:$0]  (%p1729_p3), %s992_s30, 256, %s994_s12, %s979_s28, %s1621_s14, %s1621_s14, %s1622_s17  }
 0x195 PF: > { %s1008_s11 = sand.u32 1, %s1601_s24   ;;  %p1898_p12 = scmp.ge.s32.totalorder %s1613_s27, 2 }
 0x196   : > { %s1009_s18 = scalar_lea.sflag [#allocation5], %s1008_s11 }
 0x197   : > { %p1400_p13 = pnand %p1898_p12, %p1698_p6 }
 0x199   : > { %p1401_p0 = pneg %p1400_p13 }
 0x19b   : > { %1596 = dma.done.wait (%p1401_p0), %s1009_s18, 256  }
 0x19c   : > { %1598 = vsyncadd (%p1401_p0), %s1009_s18, 4294967040  ;;  %p21_p5 = scmp.ge.s32.totalorder %s1719_s22, 4   ;;  %s1899_s24 = smov %s1605_s25 }
 0x19d   : > { %s1900_s25 = smov %s1609_s26  ;;  %s1901_s26 = smov %s1735_s10 }
 0x19e   : > { %s1902_s27 = smov %s1719_s22  ;;  %23 = sbr.rel (!%p21_p5) target bundleno = 8 (0x8), region = 101 }
 0x1a3   :  { %1015 = vsyncpa [#allocation4], 1 }
 0x1a4   :  { %1017 = vsyncpa [#allocation4 + $0x1], 1 }
 0x1a5   :  { %1018 = vsyncpa [#allocation7], 1 }
 0x1a6   :  { %1019 = vsyncpa [#allocation5], 1 }
 0x1a7   :  { %1021 = vsyncpa [#allocation5 + $0x1], 1 }

</bundles_post_ra>
